<compile_context>
chip_gen: v5e
topology: v5e:2x2
jax: 0.10.0
libtpu: 0.0.40
codegen_flags: <defaults>
</compile_context>

<pallas_src>
import functools

import jax
import jax.numpy as jnp
from jax import lax
from jax.experimental import pallas as pl
from jax.experimental.pallas import tpu as pltpu

_NEG_PAD = -1e30  # exp(scaled_pad - row_max) underflows to exactly 0.0


def _round_up(x, m):
    return (x + m - 1) // m * m


def _spatial_softmax_kernel(posw_ref, feat_ref, out_ref, *, inv_temperature):
    # posw_ref: (8, L)   rows: [pos_x, pos_y, ones, 0, 0, 0, 0, 0]  (resident)
    # feat_ref: (TR, L)  one row tile of the flattened (N*C, H*W) features
    # out_ref : (2, TR)  row 0 = expected_x, row 1 = expected_y  (lane-dense)
    f = feat_ref[...].astype(jnp.float32) * inv_temperature          # VPU
    m = jnp.max(f, axis=-1, keepdims=True)                           # XLU (only xlane reduce kept)
    e = jnp.exp(f - m)                                               # EUP

    # One MXU matmul (posW @ e^T) replaces three cross-lane reductions:
    #   sums[0] = sum(pos_x * e), sums[1] = sum(pos_y * e), sums[2] = sum(e)
    sums = lax.dot_general(
        posw_ref[...], e,
        dimension_numbers=(((1,), (1,)), ((), ())),
        preferred_element_type=jnp.float32,
    )                                                                # (8, TR)

    inv_denom = pl.reciprocal(sums[2:3, :], approx=True)             # (1, TR) on EUP
    out_ref[...] = (sums[0:2, :] * inv_denom).astype(out_ref.dtype)  # (2, TR) store


class SpatialSoftmax:
    """JAX/Pallas port of classifier_control SpatialSoftmax (NCHW forward)."""

    def __init__(self, height, width, channel, temperature=None,
                 data_format="NCHW", tile_rows=256):
        assert data_format == "NCHW", "only NCHW supported in this port"
        # tile_rows: per-grid-step row tile (multiple of 128).  256 keeps the
        # double-buffered feature tiles + f32 intermediates comfortably inside
        # the default scoped VMEM (16 MiB v5e / 32 MiB v6e,v7x) for feature
        # maps up to ~64x64; shrink it (or raise vmem_limit_bytes) for very
        # large H*W — on v7x keep total well under the 64 MiB physical VMEM.
        assert tile_rows % 128 == 0
        self.tile_rows = tile_rows
        self.height = height
        self.width = width
        self.channel = channel
        # NOTE: intentionally mirrors the torch module's `if temperature:`
        # branch — temperature=None *or* any falsy value (e.g. 0.0) means a
        # fixed temperature of 1.0.
        self.temperature = float(temperature) if temperature else 1.0

        # Reproduce np.meshgrid(linspace(-1,1,H), linspace(-1,1,W)) exactly:
        # default 'xy' indexing gives arrays of shape (W, H), flattened to H*W
        # (same quirk as the PyTorch module, kept bit-for-bit).
        lin_h = jnp.linspace(-1.0, 1.0, self.height)
        lin_w = jnp.linspace(-1.0, 1.0, self.width)
        pos_x, pos_y = jnp.meshgrid(lin_h, lin_w)            # each (W, H)
        hw = self.height * self.width
        self.pos_x = pos_x.reshape(hw).astype(jnp.float32)
        self.pos_y = pos_y.reshape(hw).astype(jnp.float32)

        # Pre-build the (8, hw_pad) MXU weight slab: rows = pos_x, pos_y, ones,
        # zero-padded to 8 sublanes and to a lane multiple of 128.
        self._hw = hw
        self._hw_pad = _round_up(hw, 128)
        posw = jnp.zeros((8, self._hw_pad), jnp.float32)
        posw = posw.at[0, :hw].set(self.pos_x)
        posw = posw.at[1, :hw].set(self.pos_y)
        posw = posw.at[2, :hw].set(1.0)
        self._posw = posw

    def __call__(self, feature):
        # feature: (N, C, H, W), any float dtype.  bf16 inputs are streamed
        # as-is (half the HBM traffic) and only cast to f32 inside the kernel.
        n, c, h, w = feature.shape
        assert c == self.channel and h == self.height and w == self.width
        rows = n * c
        hw, hw_pad = self._hw, self._hw_pad

        # Row tiling: one full-extent block for small inputs, otherwise
        # 128-multiple tiles streamed over a parallel grid.
        if rows <= self.tile_rows:
            tile_r = _round_up(rows, 8)
            rows_pad = tile_r
        else:
            tile_r = self.tile_rows
            rows_pad = _round_up(rows, tile_r)

        feat2d = feature.reshape(rows, hw)
        if rows_pad != rows or hw_pad != hw:
            feat2d = jnp.pad(
                feat2d, ((0, rows_pad - rows), (0, hw_pad - hw)),
                constant_values=_NEG_PAD)

        kernel = functools.partial(
            _spatial_softmax_kernel,
            inv_temperature=1.0 / self.temperature)

        out = pl.pallas_call(
            kernel,
            out_shape=jax.ShapeDtypeStruct((2, rows_pad), jnp.float32),
            grid=(rows_pad // tile_r,),
            in_specs=[
                pl.BlockSpec((8, hw_pad), lambda i: (0, 0)),        # posW (resident)
                pl.BlockSpec((tile_r, hw_pad), lambda i: (i, 0)),   # feature row tile
            ],
            out_specs=pl.BlockSpec((2, tile_r), lambda i: (0, i)),  # lane-dense output
            compiler_params=pltpu.CompilerParams(
                dimension_semantics=("parallel",)),
        )(self._posw, feat2d)

        # (2, rows) -> (rows, 2) -> (N, C*2), matching torch cat + view(-1, C*2)
        expected_xy = out[:, :rows].T
        return expected_xy.reshape(n, self.channel * 2)


def _reference(feature, pos_x, pos_y, temperature):
    n, c, h, w = feature.shape
    f = feature.reshape(n * c, h * w).astype(jnp.float32) / temperature
    p = jax.nn.softmax(f, axis=-1)
    ex = jnp.sum(pos_x[None, :] * p, axis=1, keepdims=True)
    ey = jnp.sum(pos_y[None, :] * p, axis=1, keepdims=True)
    return jnp.concatenate([ex, ey], axis=1).reshape(n, c * 2)


if __name__ == "__main__":
    # The approximate EUP reciprocal (approx=True) is accurate to ~1e-4
    # relative; expected keypoints live in [-1, 1], so 1e-3 is ample to catch
    # any real bug while tolerating the approximation.
    TOL = dict(atol=1e-3, rtol=1e-3)

    # Case 1: canonical small case (single tile, H*W already 128-aligned).
    N, C, H, W = 2, 4, 16, 16
    x = jax.random.normal(jax.random.PRNGKey(0), (N, C, H, W), dtype=jnp.float32)
    mod = SpatialSoftmax(height=H, width=W, channel=C)
    out = jax.block_until_ready(mod(x))
    ref = _reference(x, mod.pos_x, mod.pos_y, mod.temperature)
    assert out.shape == (N, C * 2)
    assert jnp.allclose(out, ref, **TOL)

    # Case 2: multi-tile grid (rows=270 -> two 256-row tiles), padded spatial
    # axis (H*W=168 -> 256), non-square H != W, non-default temperature.
    N2, C2, H2, W2 = 3, 90, 12, 14
    x2 = jax.random.normal(jax.random.PRNGKey(0), (N2, C2, H2, W2),
                           dtype=jnp.float32)
    mod2 = SpatialSoftmax(height=H2, width=W2, channel=C2, temperature=0.7)
    out2 = jax.block_until_ready(mod2(x2))
    ref2 = _reference(x2, mod2.pos_x, mod2.pos_y, mod2.temperature)
    assert out2.shape == (N2, C2 * 2)
    assert jnp.allclose(out2, ref2, **TOL)

    print("KERNEL_OK")
</pallas_src>

<mosaic_0001>
module attributes {stable_mosaic.version = 11 : i64} {
  func.func @_spatial_softmax_kernel(%arg0: i32, %arg1: memref<8x256xf32, #tpu.memory_space<vmem>>, %arg2: memref<8x256xf32, #tpu.memory_space<vmem>>, %arg3: memref<2x8xf32, #tpu.memory_space<vmem>>) attributes {dimension_semantics = [#tpu.dimension_semantics<parallel>], iteration_bounds = array<i64: 1>, scalar_prefetch = 0 : i64, scratch_operands = 0 : i64, tpu.core_type = #tpu.core_type<tc>, window_params = [{pipeline_mode = #tpu.pipeline_mode<synchronous>, transform_indices = @transform_0, window_bounds = array<i64: 8, 256>}, {transform_indices = @transform_1, window_bounds = array<i64: 8, 256>}, {transform_indices = @transform_2, window_bounds = array<i64: 2, 8>}]} {
    %c0 = arith.constant 0 : index
    %c0_0 = arith.constant 0 : index
    %0 = vector.load %arg2[%c0, %c0_0] : memref<8x256xf32, #tpu.memory_space<vmem>>, vector<8x256xf32>
    %cst = arith.constant 1.000000e+00 : f32
    %1 = vector.broadcast %cst : f32 to vector<8x256xf32>
    %2 = arith.mulf %0, %1 : vector<8x256xf32>
    %cst_1 = arith.constant dense<0xFF800000> : vector<8xf32>
    %3 = vector.multi_reduction <maximumf>, %2, %cst_1 [1] : vector<8x256xf32> to vector<8xf32>
    %4 = vector.shape_cast %3 : vector<8xf32> to vector<8x1xf32>
    %5 = vector.broadcast %4 : vector<8x1xf32> to vector<8x256xf32>
    %6 = arith.subf %2, %5 : vector<8x256xf32>
    %7 = math.exp %6 : vector<8x256xf32>
    %c0_2 = arith.constant 0 : index
    %c0_3 = arith.constant 0 : index
    %8 = vector.load %arg1[%c0_2, %c0_3] : memref<8x256xf32, #tpu.memory_space<vmem>>, vector<8x256xf32>
    %cst_4 = arith.constant dense<0.000000e+00> : vector<8x8xf32>
    %9 = tpu.matmul %8, %7, %cst_4 {dimension_numbers = #tpu.dot_dimension_numbers<[1], [1], [0], [0], [0, 0, 1, 0], [], []>} : vector<8x256xf32>, vector<8x256xf32>, vector<8x8xf32> -> vector<8x8xf32>
    %10 = vector.extract_strided_slice %9 {offsets = [2, 0], sizes = [1, 8], strides = [1, 1]} : vector<8x8xf32> to vector<1x8xf32>
    %11 = tpu.reciprocal %10 {approx = true} : vector<1x8xf32> -> vector<1x8xf32>
    %12 = vector.extract_strided_slice %9 {offsets = [0, 0], sizes = [2, 8], strides = [1, 1]} : vector<8x8xf32> to vector<2x8xf32>
    %13 = vector.broadcast %11 : vector<1x8xf32> to vector<2x8xf32>
    %14 = arith.mulf %12, %13 : vector<2x8xf32>
    %c0_5 = arith.constant 0 : index
    %c0_6 = arith.constant 0 : index
    %15 = vector.load %arg3[%c0_5, %c0_6] : memref<2x8xf32, #tpu.memory_space<vmem>>, vector<2x8xf32>
    tpu.vector_store %arg3[%c0_5, %c0_6], %14 {strides = array<i32>} : memref<2x8xf32, #tpu.memory_space<vmem>>, vector<2x8xf32>,
    return
  }
  func.func @transform_0(%arg0: i32) -> (i32, i32) {
    %c0_i32 = arith.constant 0 : i32
    %c0_i32_0 = arith.constant 0 : i32
    %c0_i32_1 = arith.constant 0 : i32
    return %c0_i32, %c0_i32_0 : i32, i32
  }
  func.func @transform_1(%arg0: i32) -> (i32, i32) {
    %c0_i32 = arith.constant 0 : i32
    %c0_i32_0 = arith.constant 0 : i32
    return %arg0, %c0_i32 : i32, i32
  }
  func.func @transform_2(%arg0: i32) -> (i32, i32) {
    %c0_i32 = arith.constant 0 : i32
    %c0_i32_0 = arith.constant 0 : i32
    return %c0_i32, %arg0 : i32, i32
  }
}

</mosaic_0001>

<bundles_post_ra>
// kernel: tpu_custom_call.1
= control target key start
LH: loop header
LB: loop body
LE: loop exit
PB: predicated region body
PF: predicated region fallthrough
CT: control target
= control target key end

     0   :  { %7 = vsyncpa [#allocation3], 0  ;;  %s230_s0 = inlined_call_operand.hbm [shape: f32[8,256], index: 0, kind: input, shape index: {}]   ;;  %s231_s1 = inlined_call_operand.hbm [shape: f32[8,256], index: 1, kind: input, shape index: {}]   ;;  %s232_s2 = inlined_call_operand.hbm [shape: f32[2,8], index: 2, kind: output, shape index: {}]  }
   0x1   :  { %8 = vsyncpa [#allocation6], 0 }
   0x2   :  { %9 = vsyncpa [#allocation4], 0  ;;  %s15_s11 = sshll.u32 %s230_s0, 4  ;;  %s203_s12 = smov [#allocation2]   ;;  %s16_s11 = int_to_ptr.hbm [resolvable:$true] %s15_s11 }
   0x3   :  { %s17_s13 = sshll.u32 %s203_s12, 4  ;;  %s26_s16 = sshll.u32 %s231_s1, 4  ;;  %s18_s13 = int_to_ptr.vmem [resolvable:$true] %s17_s13  ;;  %s27_s16 = int_to_ptr.hbm [resolvable:$true] %s26_s16 }
   0x4   :  { %20 = dma.hbm_to_vmem [thread:$0]  %s16_s11, 256, %s18_s13, [#allocation3]  }
   0x5   :  { %s204_s17 = smov [#allocation5]  }
   0x6   :  { %s28_s18 = sshll.u32 %s204_s17, 4  ;;  %s29_s18 = int_to_ptr.vmem [resolvable:$true] %s28_s18 }
   0x7   :  { %31 = dma.hbm_to_vmem [thread:$0]  %s27_s16, 256, %s29_s18, [#allocation6]  }
   0x8   :  { %197 = dma.done.wait [#allocation3], 256  }
   0x9   :  { %198 = vsyncadd [#allocation3], 4294967040 }
   0xa   :  { %199 = dma.done.wait [#allocation6], 256  }
   0xb   :  { %200 = vsyncadd [#allocation6], 4294967040  ;;  %v40_v0 = vld [vmem:[#allocation5] sm:$0xff]  ;;  %v41_v1 = vld [vmem:[#allocation5 + $0x8] sm:$0xff]  ;;  %s205_s0 = smov [#allocation7]   ;;  %s105_s21 = sshll.u32 %s232_s2, 4  ;;  %s106_s21 = int_to_ptr.hbm [resolvable:$true] %s105_s21 }
   0xc   :  { %v42_v2 = vmax.f32 %v40_v0, %v41_v1  ;;  %v51_v10 = vld [vmem:[#allocation2] sm:$0xff]  ;;  %v52_v11 = vld [vmem:[#allocation2 + $0x8] sm:$0xff]  ;;  %s103_s1 = sshll.u32 %s205_s0, 4  ;;  %vm96_vm0 = vcmask 58368   ;;  %s104_s1 = int_to_ptr.vmem [resolvable:$true] %s103_s1 }
   0xe   :  { %43 = vmax.xlane.f32.xlu0 %v42_v2 }
  0x81   :  { %v44_v3 = vpop.xlane.xlu0 %43 }
  0x82   :  { %v45_v4 = vsub.f32 %v40_v0, %v44_v3  ;;  %v46_v5 = vsub.f32 %v41_v1, %v44_v3 }
  0x84   :  { %v47_v6 = vmul.f32 1.442695, %v45_v4  ;;  %v49_v7 = vmul.f32 1.442695, %v46_v5 }
  0x86   :  { %119 = vpow2.f32 %v47_v6 }
  0x87   :  { %121 = vpow2.f32 %v49_v7 }
  0x8c   :  { %v120_v8 = vpop.eup %119 }
  0x8d   :  { %v122_v9 = vpop.eup %121  ;;  %68 = vmatpush.xpose.msra.mxu0 %v120_v8 }
  0x8e   :  { %88 = vmatpush.xpose.msra.mxu1 %v122_v9 }
  0x90   :  { %69 = vmatmul.f32.vlgmr.msra.gmra.mxu0 %v51_v10 }
  0x91   :  { %89 = vmatmul.f32.vlgmr.msra.gmra.mxu1 %v52_v11 }
 0x10d   :  { %v70_v12 = vpop.f32.mrf.mxu0 }
 0x10e   :  { %v90_v13 = vpop.f32.mrf.mxu1 }
 0x10f   :  { %v91_v14 = vadd.f32 %v90_v13, %v70_v12 }
 0x111   :  { %123 = vrcp.f32 %v91_v14 }
 0x117   :  { %v124_v15 = vpop.eup %123 }
 0x118   :  { %v94_v16 = vperm.slane %v124_v15, 2 }
 0x11a   :  { %v95_v17 = vmul.f32 %v94_v16, %v91_v14 }
 0x11c   :  { %97 = vst.msk [vmem:[#allocation7] sm:$0x3] %vm96_vm0, %v95_v17 }
 0x11d   :  { %108 = dma.vmem_to_hbm [thread:$0]  %s104_s1, 32, %s106_s21, [#allocation4]  }
 0x11e   :  { %201 = dma.done.wait [#allocation4], 32  }
 0x11f   :  { %202 = vsyncadd [#allocation4], 4294967264 }
 0x120   :  { %113 = vsyncpa [#allocation3], 1 }
 0x121   :  { %114 = vsyncpa [#allocation6], 1 }
 0x122   :  { %115 = vsyncpa [#allocation4], 1 }

</bundles_post_ra>
